<compile_context>
chip_gen: v7x
topology: tpu7x:2x2x1
jax: 0.10.0
libtpu: 0.0.40
codegen_flags: <defaults>
</compile_context>

<pallas_src>
import math
from functools import partial

import jax
import jax.numpy as jnp
from jax.experimental import pallas as pl
from jax.experimental.pallas import tpu as pltpu

_LOG_SQRT_2PI = math.log(math.sqrt(2.0 * math.pi))
_ENTROPY_CONST = 0.5 + 0.5 * math.log(2.0 * math.pi)


def _round_up(n, m):
    return ((n + m - 1) // m) * m


def policy_kernel(x_ref, noise_ref,
                  w1_ref, b1_ref, w2_ref, b2_ref, wh_ref, bh_ref,
                  scale_ref, logp_const_ref,
                  out_ref, *, action_dim):
    A = action_dim
    x = x_ref[...]                                                      # (TB, S)

    # fc1 + relu
    h1 = jnp.dot(x, w1_ref[...], preferred_element_type=jnp.float32) + b1_ref[...]
    h1 = jnp.maximum(h1, 0.0)                                           # (TB, H1)

    # fc2 + relu
    h2 = jnp.dot(h1, w2_ref[...], preferred_element_type=jnp.float32) + b2_ref[...]
    h2 = jnp.maximum(h2, 0.0)                                           # (TB, H2)

    # fused actor + critic head: one MXU matmul, then slice.
    head = jnp.dot(h2, wh_ref[...], preferred_element_type=jnp.float32) + bh_ref[...]
    mean = jnp.tanh(head[:, :A])                                        # (TB, A)
    v = head[:, A:A + 1]                                                # (TB, 1)

    scale = scale_ref[...]                                              # (1, A)
    logp_const = logp_const_ref[...]                                    # (1, A)
    noise = noise_ref[...]                                              # (TB, A)

    # Normal(mean, scale) sample via reparameterization (== dist.sample()).
    action = mean + scale * noise

    # log_prob at the sampled action:
    #   -((action-mean)^2)/(2 var) - log(scale) - log(sqrt(2*pi))
    #   = -0.5*noise^2 + logp_const        (logp_const precomputed in wrapper)
    logp = logp_const - 0.5 * (noise * noise)

    # Single lane-dense output tile: cols [0,A)=action, [A,2A)=logp, [2A]=v.
    out_ref[...] = jnp.zeros_like(out_ref)
    out_ref[:, 0:A] = action
    out_ref[:, A:2 * A] = logp
    out_ref[:, 2 * A:2 * A + 1] = v


def policy_forward(x, params, noise, *, batch_tile=None):
    """Policy.forward (action=None path). Returns (action, log_prob, entropy, v)."""
    B, S = x.shape
    A = params["ba"].shape[-1]

    # Batch-independent std work, hoisted out of the per-tile kernel body.
    std = params["std"]
    scale = jax.nn.softplus(std)                                 # (1, A)
    log_scale = jnp.log(scale)                                   # (1, A)
    logp_const = -(log_scale + jnp.float32(_LOG_SQRT_2PI))       # (1, A)
    entropy_row = _ENTROPY_CONST + log_scale                     # (1, A)

    # Fuse actor + critic heads into one matmul.
    wh = jnp.concatenate([params["wa"], params["wc"]], axis=1)   # (H2, A+1)
    bh = jnp.concatenate([params["ba"], params["bc"]], axis=1)   # (1,  A+1)

    # Batch tiling: tile is a multiple of 8 sublanes; pad B up to a multiple.
    if batch_tile is None:
        batch_tile = min(512, _round_up(B, 8))
    tb = _round_up(batch_tile, 8)
    Bp = _round_up(B, tb)
    if Bp != B:
        x = jnp.pad(x, ((0, Bp - B), (0, 0)))
        noise = jnp.pad(noise, ((0, Bp - B), (0, 0)))

    out_w = _round_up(2 * A + 1, 128)                    # lane-dense packed output
    grid = (Bp // tb,)
    resident = lambda i: (0, 0)                          # weights stay in VMEM

    w1, b1 = params["w1"], params["b1"]
    w2, b2 = params["w2"], params["b2"]

    packed = pl.pallas_call(
        partial(policy_kernel, action_dim=A),
        out_shape=jax.ShapeDtypeStruct((Bp, out_w), jnp.float32),
        grid_spec=pltpu.PrefetchScalarGridSpec(
            num_scalar_prefetch=0,
            grid=grid,
            in_specs=[
                pl.BlockSpec((tb, S), lambda i: (i, 0)),          # x
                pl.BlockSpec((tb, A), lambda i: (i, 0)),          # noise
                pl.BlockSpec(w1.shape, resident),
                pl.BlockSpec(b1.shape, resident),
                pl.BlockSpec(w2.shape, resident),
                pl.BlockSpec(b2.shape, resident),
                pl.BlockSpec(wh.shape, resident),
                pl.BlockSpec(bh.shape, resident),
                pl.BlockSpec(scale.shape, resident),
                pl.BlockSpec(logp_const.shape, resident),
            ],
            out_specs=pl.BlockSpec((tb, out_w), lambda i: (i, 0)),
        ),
        compiler_params=pltpu.CompilerParams(
            dimension_semantics=("parallel",)),          # shards over 2 TCs on v7x
    )(x, noise, w1, b1, w2, b2, wh, bh, scale, logp_const)

    packed = packed[:B]
    action = packed[:, 0:A]
    log_prob = packed[:, A:2 * A]
    v = packed[:, 2 * A:2 * A + 1]
    entropy = jnp.broadcast_to(entropy_row, (B, A))      # batch-independent
    return action, log_prob, entropy, v


def init_params(key, state_size, action_dim, core):
    """Deterministic init mirroring nn.Linear default (uniform(-1/sqrt(in), 1/sqrt(in)))."""
    def linear(k, fan_in, fan_out):
        kw, kb = jax.random.split(k)
        bound = 1.0 / math.sqrt(fan_in)
        w = jax.random.uniform(kw, (fan_in, fan_out), jnp.float32, -bound, bound)
        b = jax.random.uniform(kb, (1, fan_out), jnp.float32, -bound, bound)
        return w, b

    k1, k2, k3, k4 = jax.random.split(key, 4)
    w1, b1 = linear(k1, state_size, core[0])
    w2, b2 = linear(k2, core[0], core[1])
    wa, ba = linear(k3, core[-1], action_dim)
    wc, bc = linear(k4, core[-1], 1)
    std = jnp.zeros((1, action_dim), jnp.float32)  # nn.Parameter(torch.zeros(1, action_dim))
    return dict(w1=w1, b1=b1, w2=w2, b2=b2, wa=wa, ba=ba, wc=wc, bc=bc, std=std)


def _ref_forward(x, params, noise):
    """Pure-JAX reference of Policy.forward (action=None path)."""
    h1 = jax.nn.relu(x @ params["w1"] + params["b1"])
    h2 = jax.nn.relu(h1 @ params["w2"] + params["b2"])
    mean = jnp.tanh(h2 @ params["wa"] + params["ba"])
    scale = jax.nn.softplus(params["std"])
    action = mean + scale * noise
    logp = (-((action - mean) ** 2) / (2.0 * scale * scale)
            - jnp.log(scale) - _LOG_SQRT_2PI)
    ent = jnp.broadcast_to(_ENTROPY_CONST + jnp.log(scale), logp.shape)
    v = h2 @ params["wc"] + params["bc"]
    return action, logp, ent, v


if __name__ == "__main__":
    B = 2            # batch
    STATE = 16       # state_size
    CORE = (32, 32)  # hidden sizes
    A = 8            # action_dim

    root = jax.random.PRNGKey(0)
    k_params, k_x, k_noise = jax.random.split(root, 3)

    params = init_params(k_params, STATE, A, CORE)
    x = jax.random.normal(k_x, (B, STATE), jnp.float32)
    noise = jax.random.normal(k_noise, (B, A), jnp.float32)  # drives dist.sample()

    fwd = jax.jit(policy_forward, static_argnames=("batch_tile",))
    action, log_prob, entropy, v = fwd(x, params, noise)
    jax.block_until_ready((action, log_prob, entropy, v))

    assert action.shape == (B, A)
    assert log_prob.shape == (B, A)
    assert entropy.shape == (B, A)
    assert v.shape == (B, 1)

    ra, rl, re, rv = _ref_forward(x, params, noise)
    assert bool(jnp.allclose(action, ra, atol=1e-3, rtol=1e-3))
    assert bool(jnp.allclose(log_prob, rl, atol=1e-3, rtol=1e-3))
    assert bool(jnp.allclose(entropy, re, atol=1e-3, rtol=1e-3))
    assert bool(jnp.allclose(v, rv, atol=1e-3, rtol=1e-3))

    print("KERNEL_OK")
</pallas_src>

<mosaic_0001>
module attributes {stable_mosaic.version = 11 : i64} {
  func.func @policy_kernel(%arg0: i32, %arg1: memref<8x16xf32, #tpu.memory_space<vmem>>, %arg2: memref<8x8xf32, #tpu.memory_space<vmem>>, %arg3: memref<16x32xf32, #tpu.memory_space<vmem>>, %arg4: memref<1x32xf32, #tpu.memory_space<vmem>>, %arg5: memref<32x32xf32, #tpu.memory_space<vmem>>, %arg6: memref<1x32xf32, #tpu.memory_space<vmem>>, %arg7: memref<32x9xf32, #tpu.memory_space<vmem>>, %arg8: memref<1x9xf32, #tpu.memory_space<vmem>>, %arg9: memref<1x8xf32, #tpu.memory_space<vmem>>, %arg10: memref<1x8xf32, #tpu.memory_space<vmem>>, %arg11: memref<8x128xf32, #tpu.memory_space<vmem>>) attributes {dimension_semantics = [#tpu.dimension_semantics<parallel>], iteration_bounds = array<i64: 1>, scalar_prefetch = 0 : i64, scratch_operands = 0 : i64, tpu.core_type = #tpu.core_type<tc>, window_params = [{transform_indices = @transform_0, window_bounds = array<i64: 8, 16>}, {transform_indices = @transform_1, window_bounds = array<i64: 8, 8>}, {pipeline_mode = #tpu.pipeline_mode<synchronous>, transform_indices = @transform_2, window_bounds = array<i64: 16, 32>}, {pipeline_mode = #tpu.pipeline_mode<synchronous>, transform_indices = @transform_3, window_bounds = array<i64: 1, 32>}, {pipeline_mode = #tpu.pipeline_mode<synchronous>, transform_indices = @transform_4, window_bounds = array<i64: 32, 32>}, {pipeline_mode = #tpu.pipeline_mode<synchronous>, transform_indices = @transform_5, window_bounds = array<i64: 1, 32>}, {pipeline_mode = #tpu.pipeline_mode<synchronous>, transform_indices = @transform_6, window_bounds = array<i64: 32, 9>}, {pipeline_mode = #tpu.pipeline_mode<synchronous>, transform_indices = @transform_7, window_bounds = array<i64: 1, 9>}, {pipeline_mode = #tpu.pipeline_mode<synchronous>, transform_indices = @transform_8, window_bounds = array<i64: 1, 8>}, {pipeline_mode = #tpu.pipeline_mode<synchronous>, transform_indices = @transform_9, window_bounds = array<i64: 1, 8>}, {transform_indices = @transform_10, window_bounds = array<i64: 8, 128>}]} {
    %c0 = arith.constant 0 : index
    %c0_0 = arith.constant 0 : index
    %0 = vector.load %arg1[%c0, %c0_0] : memref<8x16xf32, #tpu.memory_space<vmem>>, vector<8x16xf32>
    %c0_1 = arith.constant 0 : index
    %c0_2 = arith.constant 0 : index
    %1 = vector.load %arg3[%c0_1, %c0_2] : memref<16x32xf32, #tpu.memory_space<vmem>>, vector<16x32xf32>
    %cst = arith.constant dense<0.000000e+00> : vector<8x32xf32>
    %2 = tpu.matmul %0, %1, %cst {dimension_numbers = #tpu.dot_dimension_numbers<[1], [0], [0], [1], [0, 0, 1, 1], [], []>} : vector<8x16xf32>, vector<16x32xf32>, vector<8x32xf32> -> vector<8x32xf32>
    %c0_3 = arith.constant 0 : index
    %c0_4 = arith.constant 0 : index
    %3 = vector.load %arg4[%c0_3, %c0_4] : memref<1x32xf32, #tpu.memory_space<vmem>>, vector<1x32xf32>
    %4 = vector.broadcast %3 : vector<1x32xf32> to vector<8x32xf32>
    %5 = arith.addf %2, %4 : vector<8x32xf32>
    %cst_5 = arith.constant 0.000000e+00 : f32
    %6 = vector.broadcast %cst_5 : f32 to vector<8x32xf32>
    %7 = arith.maximumf %5, %6 : vector<8x32xf32>
    %c0_6 = arith.constant 0 : index
    %c0_7 = arith.constant 0 : index
    %8 = vector.load %arg5[%c0_6, %c0_7] : memref<32x32xf32, #tpu.memory_space<vmem>>, vector<32x32xf32>
    %cst_8 = arith.constant dense<0.000000e+00> : vector<8x32xf32>
    %9 = tpu.matmul %7, %8, %cst_8 {dimension_numbers = #tpu.dot_dimension_numbers<[1], [0], [0], [1], [0, 0, 1, 1], [], []>} : vector<8x32xf32>, vector<32x32xf32>, vector<8x32xf32> -> vector<8x32xf32>
    %c0_9 = arith.constant 0 : index
    %c0_10 = arith.constant 0 : index
    %10 = vector.load %arg6[%c0_9, %c0_10] : memref<1x32xf32, #tpu.memory_space<vmem>>, vector<1x32xf32>
    %11 = vector.broadcast %10 : vector<1x32xf32> to vector<8x32xf32>
    %12 = arith.addf %9, %11 : vector<8x32xf32>
    %cst_11 = arith.constant 0.000000e+00 : f32
    %13 = vector.broadcast %cst_11 : f32 to vector<8x32xf32>
    %14 = arith.maximumf %12, %13 : vector<8x32xf32>
    %c0_12 = arith.constant 0 : index
    %c0_13 = arith.constant 0 : index
    %15 = vector.load %arg7[%c0_12, %c0_13] : memref<32x9xf32, #tpu.memory_space<vmem>>, vector<32x9xf32>
    %cst_14 = arith.constant dense<0.000000e+00> : vector<8x9xf32>
    %16 = tpu.matmul %14, %15, %cst_14 {dimension_numbers = #tpu.dot_dimension_numbers<[1], [0], [0], [1], [0, 0, 1, 1], [], []>} : vector<8x32xf32>, vector<32x9xf32>, vector<8x9xf32> -> vector<8x9xf32>
    %c0_15 = arith.constant 0 : index
    %c0_16 = arith.constant 0 : index
    %17 = vector.load %arg8[%c0_15, %c0_16] : memref<1x9xf32, #tpu.memory_space<vmem>>, vector<1x9xf32>
    %18 = vector.broadcast %17 : vector<1x9xf32> to vector<8x9xf32>
    %19 = arith.addf %16, %18 : vector<8x9xf32>
    %20 = vector.extract_strided_slice %19 {offsets = [0, 0], sizes = [8, 8], strides = [1, 1]} : vector<8x9xf32> to vector<8x8xf32>
    %21 = math.tanh %20 : vector<8x8xf32>
    %22 = vector.extract_strided_slice %19 {offsets = [0, 8], sizes = [8, 1], strides = [1, 1]} : vector<8x9xf32> to vector<8x1xf32>
    %c0_17 = arith.constant 0 : index
    %c0_18 = arith.constant 0 : index
    %23 = vector.load %arg9[%c0_17, %c0_18] : memref<1x8xf32, #tpu.memory_space<vmem>>, vector<1x8xf32>
    %c0_19 = arith.constant 0 : index
    %c0_20 = arith.constant 0 : index
    %24 = vector.load %arg10[%c0_19, %c0_20] : memref<1x8xf32, #tpu.memory_space<vmem>>, vector<1x8xf32>
    %c0_21 = arith.constant 0 : index
    %c0_22 = arith.constant 0 : index
    %25 = vector.load %arg2[%c0_21, %c0_22] : memref<8x8xf32, #tpu.memory_space<vmem>>, vector<8x8xf32>
    %26 = vector.broadcast %23 : vector<1x8xf32> to vector<8x8xf32>
    %27 = arith.mulf %26, %25 : vector<8x8xf32>
    %28 = arith.addf %21, %27 : vector<8x8xf32>
    %29 = arith.mulf %25, %25 : vector<8x8xf32>
    %cst_23 = arith.constant 5.000000e-01 : f32
    %30 = vector.broadcast %cst_23 : f32 to vector<8x8xf32>
    %31 = arith.mulf %30, %29 : vector<8x8xf32>
    %32 = vector.broadcast %24 : vector<1x8xf32> to vector<8x8xf32>
    %33 = arith.subf %32, %31 : vector<8x8xf32>
    %cst_24 = arith.constant 0.000000e+00 : f32
    %34 = vector.broadcast %cst_24 : f32 to vector<8x128xf32>
    %c0_25 = arith.constant 0 : index
    %c0_26 = arith.constant 0 : index
    %35 = vector.load %arg11[%c0_25, %c0_26] : memref<8x128xf32, #tpu.memory_space<vmem>>, vector<8x128xf32>
    tpu.vector_store %arg11[%c0_25, %c0_26], %34 {strides = array<i32>} : memref<8x128xf32, #tpu.memory_space<vmem>>, vector<8x128xf32>,
    %c0_27 = arith.constant 0 : index
    %c0_28 = arith.constant 0 : index
    %36 = vector.load %arg11[%c0_27, %c0_28] : memref<8x128xf32, #tpu.memory_space<vmem>>, vector<8x8xf32>
    tpu.vector_store %arg11[%c0_27, %c0_28], %28 {strides = array<i32>} : memref<8x128xf32, #tpu.memory_space<vmem>>, vector<8x8xf32>,
    %c0_29 = arith.constant 0 : index
    %c8 = arith.constant 8 : index
    %37 = vector.load %arg11[%c0_29, %c8] : memref<8x128xf32, #tpu.memory_space<vmem>>, vector<8x8xf32>
    tpu.vector_store %arg11[%c0_29, %c8], %33 {strides = array<i32>} : memref<8x128xf32, #tpu.memory_space<vmem>>, vector<8x8xf32>,
    %c0_30 = arith.constant 0 : index
    %c16 = arith.constant 16 : index
    %38 = vector.load %arg11[%c0_30, %c16] : memref<8x128xf32, #tpu.memory_space<vmem>>, vector<8x1xf32>
    tpu.vector_store %arg11[%c0_30, %c16], %22 {strides = array<i32>} : memref<8x128xf32, #tpu.memory_space<vmem>>, vector<8x1xf32>,
    return
  }
  func.func @transform_0(%arg0: i32) -> (i32, i32) {
    %c0_i32 = arith.constant 0 : i32
    %c0_i32_0 = arith.constant 0 : i32
    return %arg0, %c0_i32 : i32, i32
  }
  func.func @transform_1(%arg0: i32) -> (i32, i32) {
    %c0_i32 = arith.constant 0 : i32
    %c0_i32_0 = arith.constant 0 : i32
    return %arg0, %c0_i32 : i32, i32
  }
  func.func @transform_2(%arg0: i32) -> (i32, i32) {
    %c0_i32 = arith.constant 0 : i32
    %c0_i32_0 = arith.constant 0 : i32
    %c0_i32_1 = arith.constant 0 : i32
    return %c0_i32, %c0_i32_0 : i32, i32
  }
  func.func @transform_3(%arg0: i32) -> (i32, i32) {
    %c0_i32 = arith.constant 0 : i32
    %c0_i32_0 = arith.constant 0 : i32
    %c0_i32_1 = arith.constant 0 : i32
    return %c0_i32, %c0_i32_0 : i32, i32
  }
  func.func @transform_4(%arg0: i32) -> (i32, i32) {
    %c0_i32 = arith.constant 0 : i32
    %c0_i32_0 = arith.constant 0 : i32
    %c0_i32_1 = arith.constant 0 : i32
    return %c0_i32, %c0_i32_0 : i32, i32
  }
  func.func @transform_5(%arg0: i32) -> (i32, i32) {
    %c0_i32 = arith.constant 0 : i32
    %c0_i32_0 = arith.constant 0 : i32
    %c0_i32_1 = arith.constant 0 : i32
    return %c0_i32, %c0_i32_0 : i32, i32
  }
  func.func @transform_6(%arg0: i32) -> (i32, i32) {
    %c0_i32 = arith.constant 0 : i32
    %c0_i32_0 = arith.constant 0 : i32
    %c0_i32_1 = arith.constant 0 : i32
    return %c0_i32, %c0_i32_0 : i32, i32
  }
  func.func @transform_7(%arg0: i32) -> (i32, i32) {
    %c0_i32 = arith.constant 0 : i32
    %c0_i32_0 = arith.constant 0 : i32
    %c0_i32_1 = arith.constant 0 : i32
    return %c0_i32, %c0_i32_0 : i32, i32
  }
  func.func @transform_8(%arg0: i32) -> (i32, i32) {
    %c0_i32 = arith.constant 0 : i32
    %c0_i32_0 = arith.constant 0 : i32
    %c0_i32_1 = arith.constant 0 : i32
    return %c0_i32, %c0_i32_0 : i32, i32
  }
  func.func @transform_9(%arg0: i32) -> (i32, i32) {
    %c0_i32 = arith.constant 0 : i32
    %c0_i32_0 = arith.constant 0 : i32
    %c0_i32_1 = arith.constant 0 : i32
    return %c0_i32, %c0_i32_0 : i32, i32
  }
  func.func @transform_10(%arg0: i32) -> (i32, i32) {
    %c0_i32 = arith.constant 0 : i32
    %c0_i32_0 = arith.constant 0 : i32
    return %arg0, %c0_i32 : i32, i32
  }
}

</mosaic_0001>

<bundles_post_ra>
// kernel: policy_forward.1
= control target key start
LH: loop header
LB: loop body
LE: loop exit
PB: predicated region body
PF: predicated region fallthrough
CT: control target
= control target key end

     0   :  { %v401_v0 = vmov 0.0|0.0   ;;  %vm402_vm0 = vmmov 0   ;;  %v403_v3 = vmov 0.0   ;;  %vm45_vm1 = vcmask 130048   ;;  %s404_s19 = smov 8   ;;  %s528_s2 = inlined_call_operand.vmem [shape: f32[16,32], index: 2, kind: input, shape index: {}]   ;;  %s529_s10 = inlined_call_operand.vmem [shape: f32[8,128], index: 10, kind: output, shape index: {}]   ;;  %s530_s4 = inlined_call_operand.vmem [shape: f32[32,32], index: 4, kind: input, shape index: {}]   ;;  %s531_s0 = inlined_call_operand.vmem [shape: f32[8,16], index: 0, kind: input, shape index: {}]   ;;  %s532_s6 = inlined_call_operand.vmem [shape: f32[32,9], index: 6, kind: input, shape index: {}]   ;;  %s533_s3 = inlined_call_operand.vmem [shape: f32[1,32], index: 3, kind: input, shape index: {}]   ;;  %s534_s1 = inlined_call_operand.vmem [shape: f32[8,8], index: 1, kind: input, shape index: {}]   ;;  %s535_s9 = inlined_call_operand.vmem [shape: f32[1,8], index: 9, kind: input, shape index: {}]   ;;  %s536_s5 = inlined_call_operand.vmem [shape: f32[1,32], index: 5, kind: input, shape index: {}]   ;;  %s537_s7 = inlined_call_operand.vmem [shape: f32[1,9], index: 7, kind: input, shape index: {}]   ;;  %s538_s8 = inlined_call_operand.vmem [shape: f32[1,8], index: 8, kind: input, shape index: {}]  }
   0x1   :  { %380 = vmatprep.subr.bf16.mxu0 %v401_v0  ;;  %v36_v1 = vld [vmem:[%s528_s2] sm:$0xff]  ;;  %v37_v2 = vld [vmem:[%s528_s2 + $0x8] sm:$0xff]  ;;  %355 = vmatprep.mubr.msk.f32.mxu0 %vm402_vm0, %v403_v3  ;;  %311 = vst [vmem:[%s529_s10] sm:$0xff] %v403_v3  ;;  %v122_v9 = vld [vmem:[%s530_s4 + $0x10] sm:$0xff]  ;;  %vm131_vm2 = vcmask 261120   ;;  %vm312_vm3 = vcmask 64512   ;;  %vm318_vm4 = vcmask 130112  }
   0x2   :  { %v381_v4 = vpack.c.bf16 %v37_v2, %v36_v1  ;;  %383 = vmatprep.subr.bf16.mxu1 %v401_v0  ;;  %v120_v5 = vld [vmem:[%s530_s4] sm:$0xff]  ;;  %v121_v6 = vld [vmem:[%s530_s4 + $0x8] sm:$0xff]  ;;  %366 = vmatprep.mubr.msk.f32.mxu1 %vm402_vm0, %v403_v3  ;;  %v123_v10 = vld [vmem:[%s530_s4 + $0x18] sm:$0xff]  ;;  %vm324_vm5 = vcmask 138368  }
   0x3   :  { %v384_v7 = vpack.c.bf16 %v121_v6, %v120_v5  ;;  %v35_v8 = vld [vmem:[%s531_s0] sm:$0xff]  ;;  %v387_v11 = vpack.c.bf16 %v123_v10, %v122_v9  ;;  %v207_v13 = vld [vmem:[%s532_s6 + $0x8] sm:$0xff]  ;;  %v208_v20 = vld [vmem:[%s532_s6 + $0x10] sm:$0xff] }
   0x4   :  { %382 = vmatpush3.bf16.msra.mxu0 %v381_v4  ;;  %v206_v12 = vld [vmem:[%s532_s6] sm:$0xff]  ;;  %v209_v21 = vld [vmem:[%s532_s6 + $0x18] sm:$0xff] }
   0x5   :  { %385 = vmatpush3.bf16.msra.mxu1 %v384_v7  ;;  %389 = vmatprep.subr.bf16.mxu0 %v401_v0  ;;  %v390_v14 = vpack.c.bf16 %v207_v13, %v206_v12  ;;  %v330_v15 = vld [vmem:[%s533_s3] ss:$0 sm:$0xff]  ;;  %v393_v22 = vpack.c.bf16 %v209_v21, %v208_v20 }
   0x6   :  { %386 = vmatprep.subr.bf16.mxu1 %v401_v0  ;;  %v293_v23 = vld [vmem:[%s534_s1] sm:$0xff] }
   0x7   :  { %356 = vmatmul.mubr.msk.f32.vlgmr.msra.gmra.mrb[0].mxu0 %vm45_vm1, %v35_v8  ;;  %v302_v24 = vmul.f32 %v293_v23, %v293_v23  ;;  %v337_v25 = vld [vmem:[%s535_s9] ss:$0 sm:$0xff] }
   0x8   :  { %377 = vmatprep.mubr.msk.f32.mxu0 %vm402_vm0, %v403_v3  ;;  %391 = vmatpush3.bf16.msra.mxu0 %v390_v14  ;;  %v332_v28 = vld [vmem:[%s536_s5] ss:$0 sm:$0xff] }
   0x9   :  { %388 = vmatpush3.bf16.msra.mxu1 %v387_v11  ;;  %392 = vmatprep.subr.bf16.mxu0 %v401_v0  ;;  %v303_v26 = vmul.f32 0.5, %v302_v24  ;;  %v334_v33 = vld [vmem:[%s537_s7] ss:$0 sm:$0xff] }
   0xa   :  { %v336_v37 = vld [vmem:[%s538_s8] ss:$0 sm:$0xff] }
   0xb   :  { %v310_v27 = vsub.f32 %v337_v25, %v303_v26  ;;  %v300_v38 = vmul.f32 %v336_v37, %v293_v23 }
   0xc   :  { %394 = vmatpush3.bf16.msra.mxu0 %v393_v22 }
   0xd   :  { %315 = vrot.lane.b32.xlu0 %v310_v27, %s404_s19 }
  0x7f   :  { %v316_v41 = vpop.permute.xlu0 %315 }
  0xda   :  { %v115_v16 = vpop.f32.mrb[0].mxu0 }
  0xdb   :  { %v116_v17 = vadd.f32 %v330_v15, %v115_v16  ;;  %v357_v18 = vpop.f32.mrb[1].mxu0 }
  0xdd   :  { %v119_v19 = vmax.f32 %v116_v17, 0.0 }
  0xdf   :  { %367 = vmatmul.mubr.msk.f32.vlgmr.msra.gmra.mrb[0].mxu1 %vm131_vm2, %v119_v19 }
 0x1b2   :  { %v201_v29 = vpop.f32.mrb[0].mxu1 }
 0x1b3   :  { %v202_v30 = vadd.f32 %v332_v28, %v201_v29  ;;  %v368_v31 = vpop.f32.mrb[1].mxu1 }
 0x1b5   :  { %v205_v32 = vmax.f32 %v202_v30, 0.0 }
 0x1b7   :  { %378 = vmatmul.mubr.msk.f32.vlgmr.msra.gmra.mrb[2].mxu0 %vm131_vm2, %v205_v32 }
 0x28a   :  { %v286_v34 = vpop.f32.mrb[2].mxu0 }
 0x28b   :  { %v287_v35 = vadd.f32 %v334_v33, %v286_v34  ;;  %v379_v36 = vpop.f32.mrb[3].mxu0 }
 0x28d   :  { %399 = vtanh.f32 %v287_v35  ;;  %321 = vrot.lane.b32.xlu0 %v287_v35, %s404_s19 }
 0x297   :  { %v400_v39 = vpop.eup %399 }
 0x298   :  { %v301_v40 = vadd.f32 %v400_v39, %v300_v38 }
 0x29a   :  { %313 = vst.msk [vmem:[%s529_s10] sm:$0xff] %vm312_vm3, %v301_v40 }
 0x29b   :  { %319 = vst.msk [vmem:[%s529_s10] sm:$0xff] %vm318_vm4, %v316_v41 }
 0x2ff   :  { %v322_v42 = vpop.permute.xlu0 %321 }
 0x300   :  { %325 = vst.msk [vmem:[%s529_s10] sm:$0xff] %vm324_vm5, %v322_v42 }

</bundles_post_ra>
